<compile_context>
chip_gen: v6e
topology: v6e:2x2x1
jax: 0.10.0
libtpu: 0.0.40
codegen_flags: <defaults>
</compile_context>

<pallas_src>
import jax
import jax.numpy as jnp
from jax.experimental import pallas as pl
from jax.experimental.pallas import tpu as pltpu

_SQRT_2_OVER_PI = 0.7978845608028654


def _gelu_tanh(x):
    # Matches torch.nn.functional.gelu(x, approximate='tanh')
    return 0.5 * x * (1.0 + jnp.tanh(_SQRT_2_OVER_PI * (x + 0.044715 * (x * x * x))))


# ---------------------------------------------------------------------------
# Kernels
# ---------------------------------------------------------------------------
def _mlp_kernel(x_ref, wg_ref, wu_ref, wd_ref, o_ref, acc_ref):
    j = pl.program_id(1)

    @pl.when(j == 0)
    def _():
        acc_ref[...] = jnp.zeros_like(acc_ref)

    x = x_ref[...]
    # Weights are pre-transposed in the wrapper: plain (tm,H)@(H,ti) / (tm,ti)@(ti,H).
    gate = jnp.dot(x, wg_ref[...], preferred_element_type=jnp.float32)
    up = jnp.dot(x, wu_ref[...], preferred_element_type=jnp.float32)
    fuse = (_gelu_tanh(gate) * up).astype(x_ref.dtype)
    acc_ref[...] += jnp.dot(fuse, wd_ref[...], preferred_element_type=jnp.float32)

    @pl.when(j == pl.num_programs(1) - 1)
    def _():
        o_ref[...] = acc_ref[...].astype(o_ref.dtype)


def _mlp_kernel_quant(x_ref, wg_ref, wu_ref, wd_ref, gs_ref, us_ref, ds_ref,
                      o_ref, acc_ref):
    j = pl.program_id(1)

    @pl.when(j == 0)
    def _():
        acc_ref[...] = jnp.zeros_like(acc_ref)

    x = x_ref[...]
    dt = x_ref.dtype
    # int8 -> activation dtype dequant per tile in VMEM (weights stay 1B/elem in
    # HBM); the per-output-channel scaler is applied to the f32 result, which is
    # equivalent to scaling the weight columns.
    gate = jnp.dot(x, wg_ref[...].astype(dt), preferred_element_type=jnp.float32)
    gate = gate * gs_ref[...]
    up = jnp.dot(x, wu_ref[...].astype(dt), preferred_element_type=jnp.float32)
    up = up * us_ref[...]
    fuse = (_gelu_tanh(gate) * up).astype(dt)
    acc_ref[...] += jnp.dot(fuse, wd_ref[...].astype(dt),
                            preferred_element_type=jnp.float32)

    @pl.when(j == pl.num_programs(1) - 1)
    def _():
        # down_proj scaler is per output (hidden) channel -> apply once at writeback.
        o_ref[...] = (acc_ref[...] * ds_ref[...]).astype(o_ref.dtype)


# ---------------------------------------------------------------------------
# Tile selection (VMEM-budget driven, per TPU generation)
# ---------------------------------------------------------------------------
def _round_up(x, m):
    return ((x + m - 1) // m) * m


def _vmem_capacity_bytes():
    try:
        info = pltpu.get_tpu_info()
        cap = int(getattr(info, "vmem_capacity_bytes", 0))
        if cap > 0:
            return cap
    except Exception:
        pass
    return 64 * 1024 * 1024  # conservative: v7x per-TC VMEM


def _vmem_estimate(tm, ti, hidden, xbytes, wbytes, quant):
    b = 0
    b += 2 * tm * hidden * xbytes        # x, double-buffered
    b += 2 * tm * hidden * xbytes        # out, double-buffered
    b += tm * hidden * 4                 # f32 accumulator scratch
    b += 2 * 3 * ti * hidden * wbytes    # gate/up/down weight tiles, double-buffered
    if quant:
        b += 2 * (2 * ti + hidden) * 4 * 8   # scaler tiles (sublane-padded)
    return b


def _choose_tiles(rows, hidden, intermediate, xbytes, wbytes, quant):
    cap = _vmem_capacity_bytes()
    budget = int(cap * 0.70)                               # leave pipelining headroom
    vmem_limit = max(32 * 1024 * 1024,
                     min(int(cap * 0.85), cap - 4 * 1024 * 1024))

    rows8 = _round_up(max(rows, 1), 8)
    ti_opts = [t for t in (512, 256, 128) if intermediate % t == 0] or [intermediate]
    tm_opts = [t for t in (1024, 768, 512, 384, 256, 192, 128, 96, 64, 32, 16, 8)
               if t <= rows8] or [rows8]

    tm_fit, ti = tm_opts[-1], ti_opts[-1]
    done = False
    for tm_c in tm_opts:            # largest row tile first: amortizes weight streaming
        for ti_c in ti_opts:        # then largest reduction tile that still fits
            if _vmem_estimate(tm_c, ti_c, hidden, xbytes, wbytes, quant) <= budget:
                tm_fit, ti, done = tm_c, ti_c, True
                break
        if done:
            break

    # Balance the row tiles and force >= 2 parallel steps (dual-TC chips) when
    # there is enough work for it.
    n_row_steps = -(-rows8 // tm_fit)
    if rows8 >= 16:
        n_row_steps = max(n_row_steps, 2)
    tm = _round_up(-(-rows8 // n_row_steps), 8)
    rows_padded = tm * n_row_steps

    return tm, ti, n_row_steps, rows_padded, vmem_limit


# ---------------------------------------------------------------------------
# Wrapper
# ---------------------------------------------------------------------------
def gemma_mlp(x, w_gate, w_up, w_down, *, gate_scaler=None, up_scaler=None,
              down_scaler=None):
    """Fused GemmaMLP forward.

    x: (..., hidden); w_gate/w_up: (intermediate, hidden); w_down: (hidden, intermediate).
    If *_scaler are given (quantized Linear), weights are int8 and dequant is
    fused into the kernel.
    """
    orig_shape = x.shape
    hidden = orig_shape[-1]
    intermediate = w_gate.shape[0]

    quant = gate_scaler is not None
    if quant:
        assert up_scaler is not None and down_scaler is not None

    rows = 1
    for s in orig_shape[:-1]:
        rows *= s
    x2d = x.reshape(rows, hidden)

    xbytes = jnp.dtype(x.dtype).itemsize
    wbytes = jnp.dtype(w_gate.dtype).itemsize
    tm, ti, n_row_steps, rows_padded, vmem_limit = _choose_tiles(
        rows, hidden, intermediate, xbytes, wbytes, quant)

    if rows_padded != rows:
        x2d = jnp.pad(x2d, ((0, rows_padded - rows), (0, 0)))

    # One-time layout change (would be pre-applied to params in a real model):
    # both in-kernel dots then contract (last, first) -> no per-tile transposes.
    wg_t = jnp.transpose(w_gate)   # (H, I)
    wu_t = jnp.transpose(w_up)     # (H, I)
    wd_t = jnp.transpose(w_down)   # (I, H)

    grid = (n_row_steps, intermediate // ti)

    in_specs = [
        pl.BlockSpec((tm, hidden), lambda i, j: (i, 0)),      # x
        pl.BlockSpec((hidden, ti), lambda i, j: (0, j)),      # w_gate^T
        pl.BlockSpec((hidden, ti), lambda i, j: (0, j)),      # w_up^T
        pl.BlockSpec((ti, hidden), lambda i, j: (j, 0)),      # w_down^T
    ]
    args = [x2d, wg_t, wu_t, wd_t]

    if quant:
        gs2 = gate_scaler.astype(jnp.float32).reshape(1, intermediate)
        us2 = up_scaler.astype(jnp.float32).reshape(1, intermediate)
        ds2 = down_scaler.astype(jnp.float32).reshape(1, hidden)
        in_specs += [
            pl.BlockSpec((1, ti), lambda i, j: (0, j)),       # gate scaler
            pl.BlockSpec((1, ti), lambda i, j: (0, j)),       # up scaler
            pl.BlockSpec((1, hidden), lambda i, j: (0, 0)),   # down scaler
        ]
        args += [gs2, us2, ds2]
        kernel = _mlp_kernel_quant
    else:
        kernel = _mlp_kernel

    out2d = pl.pallas_call(
        kernel,
        out_shape=jax.ShapeDtypeStruct((rows_padded, hidden), x.dtype),
        grid_spec=pltpu.PrefetchScalarGridSpec(
            num_scalar_prefetch=0,
            grid=grid,
            in_specs=in_specs,
            out_specs=pl.BlockSpec((tm, hidden), lambda i, j: (i, 0)),
            scratch_shapes=[pltpu.VMEM((tm, hidden), jnp.float32)],
        ),
        compiler_params=pltpu.CompilerParams(
            dimension_semantics=("parallel", "arbitrary"),
            vmem_limit_bytes=vmem_limit,
        ),
    )(*args)

    if rows_padded != rows:
        out2d = out2d[:rows]
    return out2d.reshape(orig_shape)


def gemma_mlp_reference(x, w_gate, w_up, w_down):
    gate = _gelu_tanh(jnp.einsum("...h,ih->...i", x, w_gate))
    up = jnp.einsum("...h,ih->...i", x, w_up)
    return jnp.einsum("...i,hi->...h", gate * up, w_down).astype(x.dtype)


if __name__ == "__main__":
    key = jax.random.PRNGKey(0)
    batch, seq, hidden, intermediate = 2, 8, 32, 64

    kx, kg, ku, kd, ks = jax.random.split(key, 5)
    x = jax.random.normal(kx, (batch, seq, hidden), dtype=jnp.float32)
    w_gate = 0.1 * jax.random.normal(kg, (intermediate, hidden), dtype=jnp.float32)
    w_up = 0.1 * jax.random.normal(ku, (intermediate, hidden), dtype=jnp.float32)
    w_down = 0.1 * jax.random.normal(kd, (hidden, intermediate), dtype=jnp.float32)

    # ---- unquantized path ----
    out = jax.block_until_ready(gemma_mlp(x, w_gate, w_up, w_down))
    ref = gemma_mlp_reference(x, w_gate, w_up, w_down)
    assert out.shape == x.shape and out.dtype == x.dtype
    assert jnp.allclose(out, ref, atol=1e-2, rtol=1e-2), float(
        jnp.max(jnp.abs(out - ref)))

    # ---- quantized path (int8 weights + per-channel scaler, in-kernel dequant) ----
    kq1, kq2, kq3, ks1, ks2, ks3 = jax.random.split(ks, 6)
    wq_gate = jax.random.randint(kq1, (intermediate, hidden), -127, 128,
                                 dtype=jnp.int32).astype(jnp.int8)
    wq_up = jax.random.randint(kq2, (intermediate, hidden), -127, 128,
                               dtype=jnp.int32).astype(jnp.int8)
    wq_down = jax.random.randint(kq3, (hidden, intermediate), -127, 128,
                                 dtype=jnp.int32).astype(jnp.int8)
    gate_scaler = 0.01 * jax.random.uniform(ks1, (intermediate,), dtype=jnp.float32) + 1e-3
    up_scaler = 0.01 * jax.random.uniform(ks2, (intermediate,), dtype=jnp.float32) + 1e-3
    down_scaler = 0.01 * jax.random.uniform(ks3, (hidden,), dtype=jnp.float32) + 1e-3

    out_q = jax.block_until_ready(
        gemma_mlp(x, wq_gate, wq_up, wq_down,
                  gate_scaler=gate_scaler, up_scaler=up_scaler,
                  down_scaler=down_scaler))
    ref_q = gemma_mlp_reference(
        x,
        wq_gate.astype(jnp.float32) * gate_scaler[:, None],
        wq_up.astype(jnp.float32) * up_scaler[:, None],
        wq_down.astype(jnp.float32) * down_scaler[:, None])
    assert out_q.shape == x.shape and out_q.dtype == x.dtype
    assert jnp.allclose(out_q, ref_q, atol=1e-2, rtol=1e-2), float(
        jnp.max(jnp.abs(out_q - ref_q)))

    print("KERNEL_OK")
</pallas_src>

<mosaic_0001>
module attributes {stable_mosaic.version = 11 : i64} {
  func.func @_mlp_kernel(%arg0: i32, %arg1: i32, %arg2: memref<8x32xf32, #tpu.memory_space<vmem>>, %arg3: memref<32x64xf32, #tpu.memory_space<vmem>>, %arg4: memref<32x64xf32, #tpu.memory_space<vmem>>, %arg5: memref<64x32xf32, #tpu.memory_space<vmem>>, %arg6: memref<8x32xf32, #tpu.memory_space<vmem>>, %arg7: memref<8x32xf32, #tpu.memory_space<vmem>>) attributes {dimension_semantics = [#tpu.dimension_semantics<parallel>, #tpu.dimension_semantics<arbitrary>], iteration_bounds = array<i64: 2, 1>, scalar_prefetch = 0 : i64, scratch_operands = 1 : i64, tpu.core_type = #tpu.core_type<tc>, window_params = [{transform_indices = @transform_0, window_bounds = array<i64: 8, 32>}, {transform_indices = @transform_1, window_bounds = array<i64: 32, 64>}, {transform_indices = @transform_2, window_bounds = array<i64: 32, 64>}, {transform_indices = @transform_3, window_bounds = array<i64: 64, 32>}, {transform_indices = @transform_4, window_bounds = array<i64: 8, 32>}]} {
    %c0_i32 = arith.constant 0 : i32
    %0 = arith.cmpi eq, %arg1, %c0_i32 : i32
    %1 = arith.extui %0 : i1 to i32
    %c0_i32_0 = arith.constant 0 : i32
    %2 = arith.cmpi ne, %1, %c0_i32_0 : i32
    scf.if %2 {
      %cst_20 = arith.constant 0.000000e+00 : f32
      %30 = vector.broadcast %cst_20 : f32 to vector<8x32xf32>
      %c0_21 = arith.constant 0 : index
      %c0_22 = arith.constant 0 : index
      %31 = vector.load %arg7[%c0_21, %c0_22] : memref<8x32xf32, #tpu.memory_space<vmem>>, vector<8x32xf32>
      tpu.vector_store %arg7[%c0_21, %c0_22], %30 {strides = array<i32>} : memref<8x32xf32, #tpu.memory_space<vmem>>, vector<8x32xf32>,
    } else {
    }
    %c0 = arith.constant 0 : index
    %c0_1 = arith.constant 0 : index
    %3 = vector.load %arg2[%c0, %c0_1] : memref<8x32xf32, #tpu.memory_space<vmem>>, vector<8x32xf32>
    %c0_2 = arith.constant 0 : index
    %c0_3 = arith.constant 0 : index
    %4 = vector.load %arg3[%c0_2, %c0_3] : memref<32x64xf32, #tpu.memory_space<vmem>>, vector<32x64xf32>
    %cst = arith.constant dense<0.000000e+00> : vector<8x64xf32>
    %5 = tpu.matmul %3, %4, %cst {dimension_numbers = #tpu.dot_dimension_numbers<[1], [0], [0], [1], [0, 0, 1, 1], [], []>} : vector<8x32xf32>, vector<32x64xf32>, vector<8x64xf32> -> vector<8x64xf32>
    %c0_4 = arith.constant 0 : index
    %c0_5 = arith.constant 0 : index
    %6 = vector.load %arg4[%c0_4, %c0_5] : memref<32x64xf32, #tpu.memory_space<vmem>>, vector<32x64xf32>
    %cst_6 = arith.constant dense<0.000000e+00> : vector<8x64xf32>
    %7 = tpu.matmul %3, %6, %cst_6 {dimension_numbers = #tpu.dot_dimension_numbers<[1], [0], [0], [1], [0, 0, 1, 1], [], []>} : vector<8x32xf32>, vector<32x64xf32>, vector<8x64xf32> -> vector<8x64xf32>
    %cst_7 = arith.constant 5.000000e-01 : f32
    %8 = vector.broadcast %cst_7 : f32 to vector<8x64xf32>
    %9 = arith.mulf %8, %5 : vector<8x64xf32>
    %10 = arith.mulf %5, %5 : vector<8x64xf32>
    %11 = arith.mulf %10, %5 : vector<8x64xf32>
    %cst_8 = arith.constant 4.471500e-02 : f32
    %12 = vector.broadcast %cst_8 : f32 to vector<8x64xf32>
    %13 = arith.mulf %12, %11 : vector<8x64xf32>
    %14 = arith.addf %5, %13 : vector<8x64xf32>
    %cst_9 = arith.constant 0.797884583 : f32
    %15 = vector.broadcast %cst_9 : f32 to vector<8x64xf32>
    %16 = arith.mulf %15, %14 : vector<8x64xf32>
    %17 = math.tanh %16 : vector<8x64xf32>
    %cst_10 = arith.constant 1.000000e+00 : f32
    %18 = vector.broadcast %cst_10 : f32 to vector<8x64xf32>
    %19 = arith.addf %18, %17 : vector<8x64xf32>
    %20 = arith.mulf %9, %19 : vector<8x64xf32>
    %21 = arith.mulf %20, %7 : vector<8x64xf32>
    %c0_11 = arith.constant 0 : index
    %c0_12 = arith.constant 0 : index
    %22 = vector.load %arg7[%c0_11, %c0_12] : memref<8x32xf32, #tpu.memory_space<vmem>>, vector<8x32xf32>
    %c0_13 = arith.constant 0 : index
    %c0_14 = arith.constant 0 : index
    %23 = vector.load %arg5[%c0_13, %c0_14] : memref<64x32xf32, #tpu.memory_space<vmem>>, vector<64x32xf32>
    %cst_15 = arith.constant dense<0.000000e+00> : vector<8x32xf32>
    %24 = tpu.matmul %21, %23, %cst_15 {dimension_numbers = #tpu.dot_dimension_numbers<[1], [0], [0], [1], [0, 0, 1, 1], [], []>} : vector<8x64xf32>, vector<64x32xf32>, vector<8x32xf32> -> vector<8x32xf32>
    %25 = arith.addf %22, %24 : vector<8x32xf32>
    %c0_16 = arith.constant 0 : index
    %c0_17 = arith.constant 0 : index
    %26 = vector.load %arg7[%c0_16, %c0_17] : memref<8x32xf32, #tpu.memory_space<vmem>>, vector<8x32xf32>
    tpu.vector_store %arg7[%c0_16, %c0_17], %25 {strides = array<i32>} : memref<8x32xf32, #tpu.memory_space<vmem>>, vector<8x32xf32>,
    %c0_i32_18 = arith.constant 0 : i32
    %27 = arith.cmpi eq, %arg1, %c0_i32_18 : i32
    %28 = arith.extui %27 : i1 to i32
    %c0_i32_19 = arith.constant 0 : i32
    %29 = arith.cmpi ne, %28, %c0_i32_19 : i32
    scf.if %29 {
      %c0_20 = arith.constant 0 : index
      %c0_21 = arith.constant 0 : index
      %30 = vector.load %arg7[%c0_20, %c0_21] : memref<8x32xf32, #tpu.memory_space<vmem>>, vector<8x32xf32>
      %c0_22 = arith.constant 0 : index
      %c0_23 = arith.constant 0 : index
      %31 = vector.load %arg6[%c0_22, %c0_23] : memref<8x32xf32, #tpu.memory_space<vmem>>, vector<8x32xf32>
      tpu.vector_store %arg6[%c0_22, %c0_23], %30 {strides = array<i32>} : memref<8x32xf32, #tpu.memory_space<vmem>>, vector<8x32xf32>,
    } else {
    }
    return
  }
  func.func @transform_0(%arg0: i32, %arg1: i32) -> (i32, i32) {
    %c0_i32 = arith.constant 0 : i32
    %c0_i32_0 = arith.constant 0 : i32
    return %arg0, %c0_i32 : i32, i32
  }
  func.func @transform_1(%arg0: i32, %arg1: i32) -> (i32, i32) {
    %c0_i32 = arith.constant 0 : i32
    %c0_i32_0 = arith.constant 0 : i32
    return %c0_i32, %arg1 : i32, i32
  }
  func.func @transform_2(%arg0: i32, %arg1: i32) -> (i32, i32) {
    %c0_i32 = arith.constant 0 : i32
    %c0_i32_0 = arith.constant 0 : i32
    return %c0_i32, %arg1 : i32, i32
  }
  func.func @transform_3(%arg0: i32, %arg1: i32) -> (i32, i32) {
    %c0_i32 = arith.constant 0 : i32
    %c0_i32_0 = arith.constant 0 : i32
    return %arg1, %c0_i32 : i32, i32
  }
  func.func @transform_4(%arg0: i32, %arg1: i32) -> (i32, i32) {
    %c0_i32 = arith.constant 0 : i32
    %c0_i32_0 = arith.constant 0 : i32
    return %arg0, %c0_i32 : i32, i32
  }
}

</mosaic_0001>

<bundles_post_ra>
// kernel: tpu_custom_call.1
= control target key start
LH: loop header
LB: loop body
LE: loop exit
PB: predicated region body
PF: predicated region fallthrough
CT: control target
= control target key end

     0   :  { %9 = vsyncpa [#allocation4], 0  ;;  %s1049_s0 = inlined_call_operand.vmem [shape: f32[16,32], index: 0, kind: input, shape index: {}]   ;;  %s1050_s1 = inlined_call_operand.vmem [shape: f32[32,64], index: 1, kind: input, shape index: {}]   ;;  %s1051_s2 = inlined_call_operand.vmem [shape: f32[32,64], index: 2, kind: input, shape index: {}]   ;;  %s1052_s3 = inlined_call_operand.vmem [shape: f32[64,32], index: 3, kind: input, shape index: {}]   ;;  %s1053_s4 = inlined_call_operand.hbm [shape: f32[16,32], index: 4, kind: output, shape index: {}]  }
   0x1   :  { %11 = vsyncpa [#allocation4 + $0x1], 0  ;;  %s888_s15 = smov 0   ;;  %s890_s16 = smov 0  }
   0x2   :  { %s892_s17 = smov 0   ;;  %s894_s18 = smov 0  }
   0x3   :  { %s896_s19 = smov 0   ;;  %s898_s20 = smov 0  }
   0x4 LB: > { %s646_s21 = sadd.s32 4294967295, %s858_s20   ;;  %s647_s22 = sadd.s32 4294967294, %s858_s20   ;;  %s858_s20 = sphi %s898_s20, %s17_s20   ;;  %s854_s19 = sphi %s896_s19, %s1060_s19   ;;  %s850_s18 = sphi %s894_s18, %s1059_s18   ;;  %s846_s17 = sphi %s892_s17, %s1058_s17   ;;  %s842_s16 = sphi %s890_s16, %s1057_s16   ;;  %s838_s15 = sphi %s888_s15, %s1056_s15  }
   0x5   : > { %s29_s23 = sadd.s32 1, %s854_s19  ;;  %s140_s24 = sadd.s32 1, %s846_s17 }
   0x6   : > { %p31_p0 = scmp.ge.s32.totalorder %s29_s23, 2  ;;  %p150_p1 = scmp.ne.s32.totalorder %s846_s17, %s842_s16 }
   0x7   : > { %p151_p2 = scmp.eq.s32.totalorder %s646_s21, 1  ;;  %p156_p3 = scmp.ne.s32.totalorder %s842_s16, %s838_s15 }
   0x8   : > { %s1062_s23 = smov (%p31_p0, %s29_s23), 0  ;;  %p157_p5 = scmp.eq.s32.totalorder %s647_s22, 1 }
   0x9   : > { %p928_p4 = por %p151_p2, %p150_p1  ;;  %s137_s26 = ssub.s32 %s854_s19, %s1062_s23 }
   0xa   : > { %p653_p6 = scmp.ge.s32.totalorder %s858_s20, 1  ;;  %p138_p7 = scmp.eq.s32.totalorder %s137_s26, 0 }
   0xb   : > { %p935_p8 = por %p157_p5, %p156_p3  ;;  %p205_p9 = scmp.lt.s32.totalorder %s858_s20, 3 }
   0xc   : > { %s941_s28 = scalar_select %p138_p7, %s846_s17, %s140_s24  }
   0xd   : > { %p206_p10 = pnand %p653_p6, %p205_p9 }
   0xe   : > { %p243_p11 = scmp.lt.s32.totalorder (!%p206_p10), %s850_s18, 1  ;;  %s240_s8 = sand.u32 (!%p206_p10), 1, %s842_s16  }
   0xf   : > { %209 = sbr.rel (%p206_p10) target bundleno = 468 (0x1d4), region = 36  ;;  %s654_s9 = sshll.u32 (!%p206_p10), %s240_s8, 3 }
  0x10   : > { %s242_s11 = scalar_lea.vmem (!%p206_p10), [#allocation3], %s654_s9  ;;  %s521_s22 = scalar_lea.sflag (!%p206_p10), [#allocation4], %s240_s8 }
  0x11   : > { %s534_s12 = sshll.u32 (!%p206_p10), %s242_s11, 4  ;;  %s862_s26 = smov (!%p206_p10), [#allocation3]   ;;  %s535_s12 = int_to_ptr.vmem [resolvable:$true] %s534_s12 }
  0x12   : > { %s782_s24 = scalar_lea.vmem (!%p206_p10), %s535_s12, 128  ;;  %s786_s29 = sshll.u32 (!%p206_p10), %s862_s26, 4  ;;  %s787_s29 = int_to_ptr.vmem [resolvable:$false] %s786_s29 }
  0x13   : > { %p783_p12 = scmp.ne.s32.totalorder (!%p206_p10), %s535_s12, %s782_s24  ;;  %p789_p1 = scmp.lt.s32.totalorder (!%p206_p10), %s535_s12, %s787_s29 }
  0x14   : > { %v271_v0 = vld [vmem:[%s1050_s1 + $0x18] sm:$0xff]  ;;  %v860_v1 = vmov 0.0   ;;  %v270_v2 = vld [vmem:[%s1050_s1 + $0x10] sm:$0xff]  ;;  %vm861_vm0 = vmmov 0   ;;  %vm265_vm1 = vcmask 261120   ;;  %s244_s7 = scalar_select %p243_p11, %s850_s18, 1 }
  0x15   : > { %682 = vmatprep.subr.mxu1 %v860_v1  ;;  %690 = vmatprep.mubr.msk.f32.mxu1 %vm861_vm0, %v860_v1  ;;  %266 = vst.msk [vmem:[#allocation2] sm:$0xff] %vm265_vm1, %v860_v1  ;;  %v269_v3 = vld [vmem:[%s1050_s1 + $0x8] sm:$0xff]  ;;  %v268_v4 = vld [vmem:[%s1050_s1] sm:$0xff]  ;;  %v349_v6 = vld [vmem:[%s1051_s2 + $0x18] sm:$0xff]  ;;  %vm439_vm2 = vcmask 523264   ;;  %p784_p13 = pnand %p783_p12, %p928_p4 }
  0x16   : > { %683 = vmatpush3.msra.mxu1 %v271_v0  ;;  %704 = vmatprep.subr.mxu0 %v860_v1  ;;  %s655_s10 = sshll.u32 %s244_s7, 3  ;;  %v348_v7 = vld [vmem:[%s1051_s2 + $0x10] sm:$0xff]  ;;  %v347_v8 = vld [vmem:[%s1051_s2 + $0x8] sm:$0xff]  ;;  %v346_v9 = vld [vmem:[%s1051_s2] sm:$0xff] }
  0x17   : > { %684 = vmatprep.subr.mxu1 %v860_v1  ;;  %720 = vmatprep.mubr.msk.f32.mxu0 %vm861_vm0, %v860_v1  ;;  %s246_s21 = scalar_lea.vmem %s1049_s0, %s655_s10  ;;  %v438_v10 = vld [vmem:[%s1052_s3 + $0x38] sm:$0xff]  ;;  %v437_v11 = vld [vmem:[%s1052_s3 + $0x30] sm:$0xff]  ;;  %v436_v12 = vld [vmem:[%s1052_s3 + $0x28] sm:$0xff]  ;;  %s660_s10 = sshll.u32 %s850_s18, 7 }
  0x18   : > { %685 = vmatpush3.msra.mxu1 %v270_v2  ;;  %v267_v5 = vld [vmem:[%s246_s21] sm:$0xff]  ;;  %705 = vmatpush3.msra.mxu0 %v438_v10  ;;  %v434_v14 = vld [vmem:[%s1052_s3 + $0x18] sm:$0xff]  ;;  %v433_v15 = vld [vmem:[%s1052_s3 + $0x10] sm:$0xff]  ;;  %s1008_s21 = scalar_lea.hbm %s1053_s4, %s660_s10  ;;  %p785_p0 = pneg %p784_p13 }
  0x19   : > { %686 = vmatprep.subr.mxu1 %v860_v1  ;;  %706 = vmatprep.subr.mxu0 %v860_v1  ;;  %v435_v13 = vld [vmem:[%s1052_s3 + $0x20] sm:$0xff]  ;;  %v432_v16 = vld [vmem:[%s1052_s3 + $0x8] sm:$0xff]  ;;  %s788_s18 = scalar_lea.vmem %s787_s29, 256 }
  0x1a   : > { %687 = vmatpush3.msra.mxu1 %v269_v3  ;;  %707 = vmatpush3.msra.mxu0 %v437_v11  ;;  %v431_v17 = vld [vmem:[%s1052_s3] sm:$0xff]  ;;  %p790_p2 = scmp.lt.s32.totalorder %s788_s18, %s782_s24 }
  0x1b   : > { %688 = vmatprep.subr.mxu1 %v860_v1  ;;  %708 = vmatprep.subr.mxu0 %v860_v1 }
  0x1c   : > { %689 = vmatpush3.msra.mxu1 %v268_v4  ;;  %709 = vmatpush3.msra.mxu0 %v436_v12  ;;  %v430_v32 = vld [vmem:[#allocation2] sm:$0xff]  ;;  %p791_p3 = por %p790_p2, %p789_p1 }
  0x1d   : > { %691 = vmatmul.mubr.msk.f32.vlgmr.msra.gmra.mxu1 %vm265_vm1, %v267_v5  ;;  %693 = vmatprep.subr.mxu1 %v860_v1 }
  0x1e   : > { %694 = vmatpush3.msra.mxu1 %v349_v6  ;;  %701 = vmatprep.mubr.msk.f32.mxu1 %vm861_vm0, %v860_v1  ;;  %p792_p5 = pnand %p791_p3, %p785_p0 }
  0x1f   : > { %695 = vmatprep.subr.mxu1 %v860_v1  ;;  %710 = vmatprep.subr.mxu0 %v860_v1 }
  0x20   : > { %696 = vmatpush3.msra.mxu1 %v348_v7  ;;  %711 = vmatpush3.msra.mxu0 %v435_v13 }
  0x21   : > { %697 = vmatprep.subr.mxu1 %v860_v1  ;;  %712 = vmatprep.subr.mxu0 %v860_v1 }
  0x22   : > { %698 = vmatpush3.msra.mxu1 %v347_v8  ;;  %713 = vmatpush3.msra.mxu0 %v434_v14 }
  0x23   : > { %699 = vmatprep.subr.mxu1 %v860_v1  ;;  %714 = vmatprep.subr.mxu0 %v860_v1 }
  0x24   : > { %700 = vmatpush3.msra.mxu1 %v346_v9  ;;  %715 = vmatpush3.msra.mxu0 %v433_v15 }
  0x25   : > { %702 = vmatmul.mubr.msk.f32.vlgmr.msra.gmra.mxu1 %vm265_vm1, %v267_v5  ;;  %716 = vmatprep.subr.mxu0 %v860_v1 }
  0x26   : > { %717 = vmatpush3.msra.mxu0 %v432_v16 }
  0x27   : > { %718 = vmatprep.subr.mxu0 %v860_v1 }
  0x28   : > { %719 = vmatpush3.msra.mxu0 %v431_v17 }
  0xdd   : > { %v342_v18 = vpop.f32.mrf.mxu1 }
  0xde   : > { %v421_v19 = vmul.f32 %v342_v18, %v342_v18  ;;  %v420_v28 = vmul.f32 0.5, %v342_v18 }
  0xdf   : > { %v692_v20 = vpop.f32.mrf.mxu1 }
  0xe0   : > { %v422_v21 = vmul.f32 %v421_v19, %v342_v18 }
  0xe2   : > { %v423_v22 = vmul.f32 0.044715, %v422_v21 }
  0xe4   : > { %v424_v23 = vadd.f32 %v423_v22, %v342_v18 }
  0xe5   : > { %v416_v24 = vpop.f32.mrf.mxu1 }
  0xe6   : > { %v425_v25 = vmul.f32 0.7978846, %v424_v23 }
  0xe7   : > { %v703_v26 = vpop.f32.mrf.mxu1 }
  0xe8   : > { %780 = vtanh.f32 %v425_v25 }
  0xf5   : > { %v781_v27 = vpop.eup %780 }
  0xf6   : > { %v427_v29 = vadd.f32 1.0, %v781_v27 }
  0xf8   : > { %v428_v30 = vmul.f32 %v427_v29, %v420_v28 }
  0xfa   : > { %v429_v31 = vmul.f32 %v428_v30, %v416_v24 }
  0xfc   : > { %721 = vmatmul.mubr.msk.f32.vlgmr.msra.gmra.mxu0 %vm439_vm2, %v429_v31 }
 0x1bc   : > { %v509_v33 = vpop.f32.mrf.mxu0 }
 0x1bd   : > { %v513_v34 = vadd.f32 %v509_v33, %v430_v32 }
 0x1be   : > { %v722_v35 = vpop.f32.mrf.mxu0 }
 0x1bf   : > { %514 = vst.msk [vmem:[#allocation2] sm:$0xff] %vm265_vm1, %v513_v34 }
 0x1c6   : > { %v518_v36 = vld [vmem:[#allocation2] sm:$0xff] }
 0x1c7   : > { %519 = vst.msk [vmem:[%s242_s11] sm:$0xff] %vm265_vm1, %v518_v36 }
 0x1c8   : > { %795 = shalt.err (!%p792_p5)
}
 0x1c9   : > { %s796_s30 = scalar_lea.hbm %s1008_s21, 128  ;;  %s800_s7 = scalar_lea.hbm %s1053_s4, 256 }
 0x1ca   : > { %p797_p6 = scmp.ne.s32.totalorder %s1008_s21, %s796_s30  ;;  %p801_p10 = scmp.lt.s32.totalorder %s1008_s21, %s1053_s4 }
 0x1cb   : > { %p802_p11 = scmp.lt.s32.totalorder %s800_s7, %s796_s30 }
 0x1cc   : > { %p798_p7 = pnand %p797_p6, %p928_p4 }
 0x1cd   : > { %p803_p12 = por %p802_p11, %p801_p10 }
 0x1ce   : > { %p799_p9 = pneg %p798_p7 }
 0x1d0   : > { %p804_p13 = pnand %p803_p12, %p799_p9 }
 0x1d2   : > { %807 = shalt.err (!%p804_p13)
}
 0x1d3   : > { %723 = dma.vmem_to_hbm [thread:$0]  (%p928_p4), %s535_s12, 128, %s1008_s21, %s521_s22  }
 0x1d4 PF: > { %p729_p0 = scmp.ge.s32.totalorder %s858_s20, 2  ;;  %s546_s10 = sand.u32 1, %s838_s15  }
 0x1d5   : > { %s547_s11 = scalar_lea.sflag [#allocation4], %s546_s10 }
 0x1d6   : > { %p726_p1 = pnand %p729_p0, %p935_p8 }
 0x1d8   : > { %p727_p2 = pneg %p726_p1 }
 0x1da   : > { %833 = dma.done.wait (%p727_p2), %s547_s11, 128  }
 0x1db   : > { %835 = vsyncadd (%p727_p2), %s547_s11, 4294967168  ;;  %s17_s20 = sadd.s32 1, %s858_s20   ;;  %s1056_s15 = smov %s842_s16 }
 0x1dc   : > { %p14_p3 = scmp.ge.s32.totalorder %s17_s20, 4   ;;  %s1057_s16 = smov %s846_s17 }
 0x1dd   : > { %s1058_s17 = smov %s941_s28  ;;  %s1059_s18 = smov %s854_s19 }
 0x1de   : > { %s1060_s19 = smov %s1062_s23  ;;  %16 = sbr.rel (!%p14_p3) target bundleno = 4 (0x4), region = 88 }
 0x1e3   :  { %552 = vsyncpa [#allocation4], 1 }
 0x1e4   :  { %554 = vsyncpa [#allocation4 + $0x1], 1 }

</bundles_post_ra>
